<compile_context>
chip_gen: v6e
topology: v6e:2x2x1
jax: 0.10.0
libtpu: 0.0.40
codegen_flags: <defaults>
</compile_context>

<pallas_src>
import functools

import jax
import jax.numpy as jnp
import numpy as np
from jax import lax
from jax.experimental import pallas as pl
from jax.experimental.pallas import tpu as pltpu


# ----------------------------------------------------------------------------
# Kernel 1: reparametrization pre-pass (O(N*T), runs once).
#   z   = eps * exp(0.5 * lv) + mu
#   sq  = |z|^2 + 0.5                       (0.5 folds half of the "1 +")
#   kld = -0.5 * sum(1 + lv - mu^2 - exp(lv)),  exp(lv) reused as std*std
# ----------------------------------------------------------------------------
def _reparam_kernel(mu_ref, lv_ref, eps_ref, z_ref, sq_ref, kld_ref):
    @pl.when(pl.program_id(0) == 0)
    def _init():
        kld_ref[...] = jnp.zeros_like(kld_ref)

    mu = mu_ref[...]
    lv = lv_ref[...]
    std = jnp.exp(0.5 * lv)                       # single exp per element
    z = eps_ref[...] * std + mu
    z_ref[...] = z
    sq_ref[...] = jnp.sum(z * z, axis=1, keepdims=True) + 0.5
    kld_ref[...] += -0.5 * jnp.sum(1.0 + lv - mu * mu - std * std,
                                   keepdims=True)


# ----------------------------------------------------------------------------
# Kernel 2: tiled partition function of the pairwise Student-t kernel.
#   out[n] = sum_m 1 / (1 + |z_n - z_m|^2)        (per-row partial sums)
# ----------------------------------------------------------------------------
def _partition_kernel(zr_ref, sqr_ref, z2t_ref, sqc_ref, out_ref, *, blk):
    c = pl.program_id(1)

    # c is the innermost "arbitrary" axis -> visited 0..nc-1 in order for each
    # row block, so init-at-c==0 / accumulate-into-resident-output is safe even
    # with the row axis marked "parallel" (no state shared across row blocks).
    @pl.when(c == 0)
    def _init():
        out_ref[...] = jnp.zeros_like(out_ref)

    off = pl.multiple_of(c * blk, blk)
    z2c = z2t_ref[:, pl.ds(off, blk)]             # (T, blk), resident in VMEM
    sqc = sqc_ref[:, pl.ds(off, blk)]             # (1, blk), resident in VMEM

    # 2 * <z_r, z_c> on the MXU (the factor 2 is pre-folded into z2t).
    gram2 = lax.dot_general(zr_ref[...], z2c, (((1,), (0,)), ((), ())),
                            preferred_element_type=jnp.float32)
    # d = 1 + |z_r - z_c|^2   (the two 0.5's live in sqr / sqc)
    d = (sqr_ref[...] + sqc) - gram2
    # EUP reciprocal seed + one Newton step -> ~f32-exact 1/d, off the VALU.
    r = pl.reciprocal(d, approx=True)
    r = r * (2.0 - d * r)
    out_ref[...] += jnp.sum(r, axis=1, keepdims=True)   # lane reduce -> (blk, 1)


def _round_up(x, m):
    return (x + m - 1) // m * m


def _device_defaults():
    """(tile_size, vmem_limit_bytes) tuned per TPU generation."""
    kind = ""
    try:
        kind = jax.devices()[0].device_kind.lower()
    except Exception:
        pass
    if "v6" in kind:                            # v6e: 128 MiB VMEM -> go big
        return 1024, 96 * 1024 * 1024
    if "v5 lite" in kind or "v5e" in kind:      # v5e: 128 MiB VMEM, low HBM BW
        return 512, 64 * 1024 * 1024
    # v7x (64 MiB physical VMEM) and unknown chips: keep headroom.
    return 512, 48 * 1024 * 1024


def vtsne_forward(mu_w, lv_w, pij, i, j, key, *, tile=None):
    """VTSNE.forward(pij, i, j), with mu_w / lv_w the embedding tables."""
    n_points, n_topics = mu_w.shape
    b = i.shape[0]
    k_full, k_i, k_j = jax.random.split(key, 3)

    # Three independent .normal_() draws, matching the reference module.
    # TODO(synk): for very large N the eps table could be drawn in-kernel with
    # pltpu.prng_seed/stateful_normal (different stream vs this host-side ref).
    eps_full = jax.random.normal(k_full, (n_points, n_topics), jnp.float32)
    eps_i = jax.random.normal(k_i, (b, n_topics), jnp.float32)
    eps_j = jax.random.normal(k_j, (b, n_topics), jnp.float32)

    tile_target, vmem_limit = _device_defaults()
    if tile is not None:
        tile_target = tile
    blk = _round_up(int(min(tile_target, _round_up(n_points, 128))), 128)
    n_pad = _round_up(n_points, blk)
    nb = n_pad // blk
    pad = n_pad - n_points

    f32 = jnp.float32
    mu_p = jnp.pad(mu_w.astype(f32), ((0, pad), (0, 0)))
    lv_p = jnp.pad(lv_w.astype(f32), ((0, pad), (0, 0)))
    eps_p = jnp.pad(eps_full, ((0, pad), (0, 0)))

    # --- pre-pass: z table, row norms (+0.5), KL(reparam) --------------------
    row_spec = pl.BlockSpec((blk, n_topics), lambda r: (r, 0))
    z, sqp, kld = pl.pallas_call(
        _reparam_kernel,
        out_shape=(jax.ShapeDtypeStruct((n_pad, n_topics), f32),
                   jax.ShapeDtypeStruct((n_pad, 1), f32),
                   jax.ShapeDtypeStruct((1, 1), f32)),
        grid_spec=pltpu.PrefetchScalarGridSpec(
            num_scalar_prefetch=0,
            grid=(nb,),
            in_specs=[row_spec, row_spec, row_spec],
            out_specs=[row_spec,
                       pl.BlockSpec((blk, 1), lambda r: (r, 0)),
                       pl.BlockSpec((1, 1), lambda r: (0, 0))]),
        compiler_params=pltpu.CompilerParams(
            dimension_semantics=("arbitrary",),
            vmem_limit_bytes=vmem_limit),
    )(mu_p, lv_p, eps_p)

    # Mask padded rows out of the partition sum: huge norm -> 1/d ~ 1e-30.
    if pad:
        rows = jnp.arange(n_pad, dtype=jnp.int32)[:, None]
        sqp = jnp.where(rows < n_points, sqp, f32(1e30))

    z2t = (2.0 * z).T                      # (T, n_pad): column operand, 2x folded
    sqc = sqp.reshape(1, n_pad)            # (1, n_pad): column norms (+0.5)

    # --- O(N^2) partition function -------------------------------------------
    row_sums = pl.pallas_call(
        functools.partial(_partition_kernel, blk=blk),
        out_shape=jax.ShapeDtypeStruct((n_pad, 1), f32),
        grid_spec=pltpu.PrefetchScalarGridSpec(
            num_scalar_prefetch=0,
            grid=(nb, nb),
            in_specs=[
                pl.BlockSpec((blk, n_topics), lambda r, c: (r, 0)),    # z rows
                pl.BlockSpec((blk, 1), lambda r, c: (r, 0)),           # row norms
                pl.BlockSpec((n_topics, n_pad), lambda r, c: (0, 0)),  # (2z)^T, resident
                pl.BlockSpec((1, n_pad), lambda r, c: (0, 0)),         # col norms, resident
            ],
            out_specs=pl.BlockSpec((blk, 1), lambda r, c: (r, 0))),
        compiler_params=pltpu.CompilerParams(
            dimension_semantics=("parallel", "arbitrary"),
            vmem_limit_bytes=vmem_limit),
    )(z, sqp, z2t, sqc)

    # --- tiny O(B) finalize in plain JAX --------------------------------------
    part = jnp.sum(row_sums) - f32(n_points)
    kld_rp = kld[0, 0]

    xi = eps_i * jnp.exp(0.5 * lv_w[i]) + mu_w[i]
    xj = eps_j * jnp.exp(0.5 * lv_w[j]) + mu_w[j]
    num = 1.0 / jnp.sum(1.0 + (xi - xj) ** 2, axis=1)
    qij = num / part
    pij = pij.astype(f32)
    loss_kld = jnp.sum(pij * (jnp.log(pij) - jnp.log(qij)))
    return loss_kld + kld_rp * 1e-7


# Pure-JAX reference (mirrors the PyTorch math) for the in-script sanity check.
def vtsne_reference(mu_w, lv_w, pij, i, j, key):
    n_points, n_topics = mu_w.shape
    b = i.shape[0]
    k_full, k_i, k_j = jax.random.split(key, 3)

    def rep(mu, lv, eps):
        z = eps * jnp.exp(0.5 * lv) + mu
        kld = -0.5 * jnp.sum(1.0 + lv - mu ** 2 - jnp.exp(lv))
        return z, kld

    x, kld_rp = rep(mu_w, lv_w, jax.random.normal(k_full, (n_points, n_topics)))
    xi, _ = rep(mu_w[i], lv_w[i], jax.random.normal(k_i, (b, n_topics)))
    xj, _ = rep(mu_w[j], lv_w[j], jax.random.normal(k_j, (b, n_topics)))

    dkl2 = jnp.sum((x[None, :, :] - x[:, None, :]) ** 2, axis=2)
    part = jnp.sum(1.0 / (1.0 + dkl2)) - n_points
    num = 1.0 / jnp.sum(1.0 + (xi - xj) ** 2, axis=1)
    qij = num / part
    loss_kld = jnp.sum(pij * (jnp.log(pij) - jnp.log(qij)))
    return loss_kld + kld_rp * 1e-7


if __name__ == "__main__":
    n_points, n_topics, batch = 300, 16, 8

    root = jax.random.PRNGKey(0)
    k_mu, k_lv, k_pij, k_i, k_j, k_noise = jax.random.split(root, 6)

    # nn.Embedding default init: N(0, 1).
    mu_w = jax.random.normal(k_mu, (n_points, n_topics), jnp.float32)
    lv_w = jax.random.normal(k_lv, (n_points, n_topics), jnp.float32)

    pij = jax.random.uniform(k_pij, (batch,), jnp.float32, minval=0.05, maxval=1.0)
    i_idx = jax.random.randint(k_i, (batch,), 0, n_points)
    j_idx = jax.random.randint(k_j, (batch,), 0, n_points)

    # tile=128 keeps the toy problem multi-block (3x3 grid) and exercises the
    # N-padding/masking path (300 -> 384); real sizes use per-device defaults.
    loss = jax.block_until_ready(
        vtsne_forward(mu_w, lv_w, pij, i_idx, j_idx, k_noise, tile=128))
    ref = jax.block_until_ready(
        vtsne_reference(mu_w, lv_w, pij, i_idx, j_idx, k_noise))

    np.testing.assert_allclose(np.asarray(loss), np.asarray(ref),
                               rtol=1e-3, atol=1e-4)
    print("KERNEL_OK")
</pallas_src>

<mosaic_0001>
module attributes {stable_mosaic.version = 11 : i64} {
  func.func @_reparam_kernel(%arg0: i32, %arg1: memref<128x16xf32, #tpu.memory_space<vmem>>, %arg2: memref<128x16xf32, #tpu.memory_space<vmem>>, %arg3: memref<128x16xf32, #tpu.memory_space<vmem>>, %arg4: memref<128x16xf32, #tpu.memory_space<vmem>>, %arg5: memref<128x1xf32, #tpu.memory_space<vmem>>, %arg6: memref<1x1xf32, #tpu.memory_space<vmem>>) attributes {dimension_semantics = [#tpu.dimension_semantics<arbitrary>], iteration_bounds = array<i64: 3>, scalar_prefetch = 0 : i64, scratch_operands = 0 : i64, tpu.core_type = #tpu.core_type<tc>, window_params = [{transform_indices = @transform_0, window_bounds = array<i64: 128, 16>}, {transform_indices = @transform_1, window_bounds = array<i64: 128, 16>}, {transform_indices = @transform_2, window_bounds = array<i64: 128, 16>}, {transform_indices = @transform_3, window_bounds = array<i64: 128, 16>}, {transform_indices = @transform_4, window_bounds = array<i64: 128, 1>}, {pipeline_mode = #tpu.pipeline_mode<synchronous>, transform_indices = @transform_5, window_bounds = array<i64: 1, 1>}]} {
    %c0_i32 = arith.constant 0 : i32
    %0 = arith.cmpi eq, %arg0, %c0_i32 : i32
    %1 = arith.extui %0 : i1 to i32
    %c0_i32_0 = arith.constant 0 : i32
    %2 = arith.cmpi ne, %1, %c0_i32_0 : i32
    scf.if %2 {
      %cst_19 = arith.constant 0.000000e+00 : f32
      %34 = vector.broadcast %cst_19 : f32 to vector<1x1xf32>
      %c0_20 = arith.constant 0 : index
      %c0_21 = arith.constant 0 : index
      %35 = vector.load %arg6[%c0_20, %c0_21] : memref<1x1xf32, #tpu.memory_space<vmem>>, vector<1x1xf32>
      tpu.vector_store %arg6[%c0_20, %c0_21], %34 {strides = array<i32>} : memref<1x1xf32, #tpu.memory_space<vmem>>, vector<1x1xf32>,
    } else {
    }
    %c0 = arith.constant 0 : index
    %c0_1 = arith.constant 0 : index
    %3 = vector.load %arg1[%c0, %c0_1] : memref<128x16xf32, #tpu.memory_space<vmem>>, vector<128x16xf32>
    %c0_2 = arith.constant 0 : index
    %c0_3 = arith.constant 0 : index
    %4 = vector.load %arg2[%c0_2, %c0_3] : memref<128x16xf32, #tpu.memory_space<vmem>>, vector<128x16xf32>
    %cst = arith.constant 5.000000e-01 : f32
    %5 = vector.broadcast %cst : f32 to vector<128x16xf32>
    %6 = arith.mulf %5, %4 : vector<128x16xf32>
    %7 = math.exp %6 : vector<128x16xf32>
    %c0_4 = arith.constant 0 : index
    %c0_5 = arith.constant 0 : index
    %8 = vector.load %arg3[%c0_4, %c0_5] : memref<128x16xf32, #tpu.memory_space<vmem>>, vector<128x16xf32>
    %9 = arith.mulf %8, %7 : vector<128x16xf32>
    %10 = arith.addf %9, %3 : vector<128x16xf32>
    %c0_6 = arith.constant 0 : index
    %c0_7 = arith.constant 0 : index
    %11 = vector.load %arg4[%c0_6, %c0_7] : memref<128x16xf32, #tpu.memory_space<vmem>>, vector<128x16xf32>
    tpu.vector_store %arg4[%c0_6, %c0_7], %10 {strides = array<i32>} : memref<128x16xf32, #tpu.memory_space<vmem>>, vector<128x16xf32>,
    %12 = arith.mulf %10, %10 : vector<128x16xf32>
    %cst_8 = arith.constant dense<0.000000e+00> : vector<128xf32>
    %13 = vector.multi_reduction <add>, %12, %cst_8 [1] : vector<128x16xf32> to vector<128xf32>
    %14 = vector.shape_cast %13 : vector<128xf32> to vector<128x1xf32>
    %cst_9 = arith.constant 5.000000e-01 : f32
    %15 = vector.broadcast %cst_9 : f32 to vector<128x1xf32>
    %16 = arith.addf %14, %15 : vector<128x1xf32>
    %c0_10 = arith.constant 0 : index
    %c0_11 = arith.constant 0 : index
    %17 = vector.load %arg5[%c0_10, %c0_11] : memref<128x1xf32, #tpu.memory_space<vmem>>, vector<128x1xf32>
    tpu.vector_store %arg5[%c0_10, %c0_11], %16 {strides = array<i32>} : memref<128x1xf32, #tpu.memory_space<vmem>>, vector<128x1xf32>,
    %c0_12 = arith.constant 0 : index
    %c0_13 = arith.constant 0 : index
    %18 = vector.load %arg6[%c0_12, %c0_13] : memref<1x1xf32, #tpu.memory_space<vmem>>, vector<1x1xf32>
    %cst_14 = arith.constant 1.000000e+00 : f32
    %19 = vector.broadcast %cst_14 : f32 to vector<128x16xf32>
    %20 = arith.addf %19, %4 : vector<128x16xf32>
    %21 = arith.mulf %3, %3 : vector<128x16xf32>
    %22 = arith.subf %20, %21 : vector<128x16xf32>
    %23 = arith.mulf %7, %7 : vector<128x16xf32>
    %24 = arith.subf %22, %23 : vector<128x16xf32>
    %25 = vector.shape_cast %24 : vector<128x16xf32> to vector<1x128x16xf32>
    %cst_15 = arith.constant dense<0.000000e+00> : vector<1xf32>
    %26 = vector.multi_reduction <add>, %25, %cst_15 [1, 2] : vector<1x128x16xf32> to vector<1xf32>
    %27 = vector.shape_cast %26 : vector<1xf32> to vector<1x1x1xf32>
    %28 = vector.extract %27[0, 0, 0] : f32 from vector<1x1x1xf32>
    %29 = vector.broadcast %28 : f32 to vector<1x1xf32>
    %cst_16 = arith.constant -5.000000e-01 : f32
    %30 = vector.broadcast %cst_16 : f32 to vector<1x1xf32>
    %31 = arith.mulf %30, %29 : vector<1x1xf32>
    %32 = arith.addf %18, %31 : vector<1x1xf32>
    %c0_17 = arith.constant 0 : index
    %c0_18 = arith.constant 0 : index
    %33 = vector.load %arg6[%c0_17, %c0_18] : memref<1x1xf32, #tpu.memory_space<vmem>>, vector<1x1xf32>
    tpu.vector_store %arg6[%c0_17, %c0_18], %32 {strides = array<i32>} : memref<1x1xf32, #tpu.memory_space<vmem>>, vector<1x1xf32>,
    return
  }
  func.func @transform_0(%arg0: i32) -> (i32, i32) {
    %c0_i32 = arith.constant 0 : i32
    %c0_i32_0 = arith.constant 0 : i32
    return %arg0, %c0_i32 : i32, i32
  }
  func.func @transform_1(%arg0: i32) -> (i32, i32) {
    %c0_i32 = arith.constant 0 : i32
    %c0_i32_0 = arith.constant 0 : i32
    return %arg0, %c0_i32 : i32, i32
  }
  func.func @transform_2(%arg0: i32) -> (i32, i32) {
    %c0_i32 = arith.constant 0 : i32
    %c0_i32_0 = arith.constant 0 : i32
    return %arg0, %c0_i32 : i32, i32
  }
  func.func @transform_3(%arg0: i32) -> (i32, i32) {
    %c0_i32 = arith.constant 0 : i32
    %c0_i32_0 = arith.constant 0 : i32
    return %arg0, %c0_i32 : i32, i32
  }
  func.func @transform_4(%arg0: i32) -> (i32, i32) {
    %c0_i32 = arith.constant 0 : i32
    %c0_i32_0 = arith.constant 0 : i32
    return %arg0, %c0_i32 : i32, i32
  }
  func.func @transform_5(%arg0: i32) -> (i32, i32) {
    %c0_i32 = arith.constant 0 : i32
    %c0_i32_0 = arith.constant 0 : i32
    %c0_i32_1 = arith.constant 0 : i32
    return %c0_i32, %c0_i32_0 : i32, i32
  }
}

</mosaic_0001>

<bundles_post_ra>
// kernel: tpu_custom_call.1
= control target key start
LH: loop header
LB: loop body
LE: loop exit
PB: predicated region body
PF: predicated region fallthrough
CT: control target
= control target key end

     0   :  { %11 = vsyncpa [#allocation3], 0  ;;  %s934_s18 = smov 0   ;;  %s1426_s0 = inlined_call_operand.vmem [shape: f32[384,16], index: 0, kind: input, shape index: {}]   ;;  %s1427_s1 = inlined_call_operand.vmem [shape: f32[384,16], index: 1, kind: input, shape index: {}]   ;;  %s1428_s2 = inlined_call_operand.vmem [shape: f32[384,16], index: 2, kind: input, shape index: {}]   ;;  %s1429_s3 = inlined_call_operand.vmem [shape: f32[384,16], index: 3, kind: output, shape index: {0}]   ;;  %s1430_s4 = inlined_call_operand.vmem [shape: f32[384,1], index: 4, kind: output, shape index: {1}]   ;;  %s1431_s5 = inlined_call_operand.hbm [shape: f32[1,1], index: 5, kind: output, shape index: {2}]  }
   0x1 LB: > { %s940_s19 = sadd.s32 4294967295, %s900_s18   ;;  %p800_p0 = scmp.ge.s32.totalorder %s900_s18, 1  ;;  %s900_s18 = sphi %s934_s18, %s17_s18  }
   0x2   : > { %p211_p1 = scmp.lt.s32.totalorder %s900_s18, 4 }
   0x4   : > { %p212_p2 = pnand %p800_p0, %p211_p1 }
   0x6   : > { %215 = sbr.rel (%p212_p2) target bundleno = 289 (0x121), region = 32 }
   0xb   : > { %s801_s20 = sshll.u32 %s940_s19, 4  ;;  %p811_p4 = scmp.ne.s32.totalorder %s940_s19, 0 }
   0xc   : > { %p255_p3 = scmp.lt.s32.totalorder %s801_s20, 47 }
   0xe   : > { %s1436_s20 = smov (!%p255_p3, %s801_s20), 47  ;;  %287 = sbr.rel (%p811_p4) target bundleno = 21 (0x15), region = 36 }
   0xf   : > { %s802_s21 = sshll.u32 %s1436_s20, 3 }
  0x10   : > { %s948_s24 = scalar_lea.vmem %s1426_s0, %s802_s21  ;;  %s953_s27 = scalar_lea.vmem %s1427_s1, %s802_s21 }
  0x11   : > { %s958_s30 = scalar_lea.vmem %s1428_s2, %s802_s21  ;;  %s963_s8 = scalar_lea.vmem %s1429_s3, %s802_s21 }
  0x12   : > { %s968_s11 = scalar_lea.vmem %s1430_s4, %s802_s21 }
  0x13   : > { %vm288_vm0 = vcmask 0   ;;  %v902_v0 = vmov 0.0  }
  0x14   : > { %289 = vst.msk [vmem:[#allocation2] sm:$0x1] %vm288_vm0, %v902_v0 }
  0x15 PF: > { %v972_v1 = vld [vmem:[%s948_s24] sm:$0xff]  ;;  %v975_v2 = vld [vmem:[%s948_s24 + $0x8] sm:$0xff]  ;;  %v978_v3 = vld [vmem:[%s948_s24 + $0x10] sm:$0xff]  ;;  %vm418_vm1 = vcmask 130048   ;;  %vm515_vm2 = vcmask 7168   ;;  %s903_s13 = smov [#allocation2]  }
  0x16   : > { %v981_v4 = vld [vmem:[%s948_s24 + $0x18] sm:$0xff]  ;;  %v984_v5 = vld [vmem:[%s948_s24 + $0x20] sm:$0xff]  ;;  %v987_v6 = vld [vmem:[%s948_s24 + $0x28] sm:$0xff]  ;;  %v1017_v18 = vmul.f32 %v972_v1, %v972_v1  ;;  %v1029_v23 = vmul.f32 %v975_v2, %v975_v2  ;;  %v1033_v24 = vmul.f32 %v978_v3, %v978_v3  ;;  %s683_s14 = sshll.u32 %s903_s13, 4  ;;  %vm656_vm3 = vcmask 0   ;;  %p822_p5 = scmp.eq.s32.totalorder %s940_s19, 2  ;;  %s684_s14 = int_to_ptr.vmem [resolvable:$true] %s683_s14 }
  0x17   : > { %v990_v7 = vld [vmem:[%s948_s24 + $0x30] sm:$0xff]  ;;  %v306_v8 = vld [vmem:[%s953_s27] sm:$0xff]  ;;  %v994_v9 = vld [vmem:[%s953_s27 + $0x8] sm:$0xff]  ;;  %v1044_v28 = vmul.f32 %v981_v4, %v981_v4  ;;  %v1048_v29 = vmul.f32 %v984_v5, %v984_v5  ;;  %v1052_v30 = vmul.f32 %v987_v6, %v987_v6  ;;  %s866_s15 = scalar_lea.vmem %s684_s14, 16  ;;  %s872_s16 = scalar_lea.vmem %s684_s14, 32 }
  0x18   : > { %v997_v10 = vld [vmem:[%s953_s27 + $0x10] sm:$0xff]  ;;  %v1000_v11 = vld [vmem:[%s953_s27 + $0x18] sm:$0xff]  ;;  %v1003_v12 = vld [vmem:[%s953_s27 + $0x20] sm:$0xff]  ;;  %v322_v16 = vmul.f32 0.5, %v306_v8  ;;  %v323_v17 = vmul.f32 0.5, %v994_v9  ;;  %v1066_v35 = vmul.f32 %v990_v7, %v990_v7  ;;  %v1114_v61 = vadd.f32 1.0, %v306_v8  ;;  %p867_p6 = scmp.ne.s32.totalorder %s684_s14, %s866_s15  ;;  %p873_p9 = scmp.lt.s32.totalorder %s684_s14, %s684_s14 }
  0x19   : > { %v1006_v13 = vld [vmem:[%s948_s24 + $0x38] sm:$0xff]  ;;  %v1009_v14 = vld [vmem:[%s948_s24 + $0x40] sm:$0xff]  ;;  %v1012_v15 = vld [vmem:[%s953_s27 + $0x28] sm:$0xff]  ;;  %v324_v21 = vmul.f32 0.5, %v997_v10  ;;  %v325_v22 = vmul.f32 0.5, %v1000_v11  ;;  %v326_v27 = vmul.f32 0.5, %v1003_v12  ;;  %p874_p10 = scmp.lt.s32.totalorder %s872_s16, %s866_s15 }
  0x1a   : > { %v1020_v19 = vld [vmem:[%s948_s24 + $0x48] sm:$0xff]  ;;  %v1023_v20 = vld [vmem:[%s953_s27 + $0x30] sm:$0xff]  ;;  %v1039_v26 = vld [vmem:[%s953_s27 + $0x38] sm:$0xff]  ;;  %v327_v34 = vmul.f32 0.5, %v1012_v15  ;;  %v1070_v36 = vmul.f32 %v1006_v13, %v1006_v13  ;;  %v1074_v37 = vmul.f32 %v1009_v14, %v1009_v14  ;;  %v338_v40 = vmul.f32 1.442695, %v322_v16  ;;  %p868_p7 = pnand %p867_p6, %p822_p5 }
  0x1b   : > { %v1036_v25 = vld [vmem:[%s948_s24 + $0x50] sm:$0xff]  ;;  %v1055_v31 = vld [vmem:[%s948_s24 + $0x58] sm:$0xff]  ;;  %v1058_v32 = vld [vmem:[%s948_s24 + $0x60] sm:$0xff]  ;;  %v328_v39 = vmul.f32 0.5, %v1023_v20  ;;  %v340_v41 = vmul.f32 1.442695, %v323_v17  ;;  %v1082_v42 = vmul.f32 %v1020_v19, %v1020_v19  ;;  %p875_p11 = por %p874_p10, %p873_p9 }
  0x1c   : > { %v1061_v33 = vld [vmem:[%s953_s27 + $0x40] sm:$0xff]  ;;  %v1077_v38 = vld [vmem:[%s953_s27 + $0x48] sm:$0xff]  ;;  %v1085_v43 = vld [vmem:[%s953_s27 + $0x50] sm:$0xff]  ;;  %v329_v44 = vmul.f32 0.5, %v1039_v26  ;;  %v342_v45 = vmul.f32 1.442695, %v324_v21  ;;  %v1090_v47 = vmul.f32 %v1036_v25, %v1036_v25  ;;  %834 = vpow2.f32 %v338_v40  ;;  %p869_p8 = pneg %p868_p7 }
  0x1d   : > { %v344_v46 = vmul.f32 1.442695, %v325_v22  ;;  %v317_v48 = vld [vmem:[%s953_s27 + $0x58] sm:$0xff]  ;;  %v318_v49 = vld [vmem:[%s953_s27 + $0x60] sm:$0xff]  ;;  %v330_v50 = vmul.f32 0.5, %v1061_v33  ;;  %v1097_v52 = vmul.f32 %v1055_v31, %v1055_v31  ;;  %v1100_v53 = vld [vmem:[%s953_s27 + $0x68] sm:$0xff]  ;;  %836 = vpow2.f32 %v340_v41 }
  0x1e   : > { %v346_v51 = vmul.f32 1.442695, %v326_v27  ;;  %v331_v54 = vmul.f32 0.5, %v1077_v38  ;;  %v348_v55 = vmul.f32 1.442695, %v327_v34  ;;  %v1105_v56 = vmul.f32 %v1058_v32, %v1058_v32  ;;  %v1108_v57 = vld [vmem:[%s948_s24 + $0x68] sm:$0xff]  ;;  %p876_p12 = pnand %p875_p11, %p869_p8 }
  0x1f   : > { %v1111_v58 = vld [vmem:[%s948_s24 + $0x70] sm:$0xff]  ;;  %v332_v59 = vmul.f32 0.5, %v1085_v43  ;;  %838 = vpow2.f32 %v342_v45  ;;  %v350_v60 = vmul.f32 1.442695, %v328_v39  ;;  %v1117_v62 = vld [vmem:[%s948_s24 + $0x78] sm:$0xff]  ;;  %v333_v0 = vmul.f32 0.5, %v317_v48 }
  0x20   : > { %1433 = vst [vmem:[#allocation5_spill] sm:$0xff] %v1117_v62  ;;  %v1120_v63 = vld [vmem:[%s953_s27 + $0x70] sm:$0xff]  ;;  %v334_v16 = vmul.f32 0.5, %v318_v49  ;;  %840 = vpow2.f32 %v344_v46  ;;  %v352_v17 = vmul.f32 1.442695, %v329_v44  ;;  %v1123_v21 = vld [vmem:[%s953_s27 + $0x78] sm:$0xff]  ;;  %v1129_v8 = vmul.f32 %v1108_v57, %v1108_v57 }
  0x21   : > { %v335_v22 = vmul.f32 0.5, %v1100_v53  ;;  %842 = vpow2.f32 %v346_v51  ;;  %v354_v27 = vmul.f32 1.442695, %v330_v50  ;;  %v534_v34 = vadd.f32 1.0, %v994_v9 }
  0x22   : > { %844 = vpow2.f32 %v348_v55  ;;  %v356_v39 = vmul.f32 1.442695, %v331_v54  ;;  %v1133_v40 = vmul.f32 %v1111_v58, %v1111_v58  ;;  %v336_v41 = vmul.f32 0.5, %v1120_v63 }
  0x23   : > { %846 = vpow2.f32 %v350_v60  ;;  %v358_v44 = vmul.f32 1.442695, %v332_v59  ;;  %v1138_v45 = vmul.f32 %v1117_v62, %v1117_v62  ;;  %v337_v9 = vmul.f32 0.5, %v1123_v21 }
  0x24   : > { %848 = vpow2.f32 %v352_v17  ;;  %v360_v46 = vmul.f32 1.442695, %v333_v0  ;;  %v565_v50 = vsub.f32 %v1114_v61, %v1017_v18  ;;  %v362_v51 = vmul.f32 1.442695, %v334_v16 }
  0x25   : > { %850 = vpow2.f32 %v354_v27  ;;  %v364_v54 = vmul.f32 1.442695, %v335_v22  ;;  %v566_v55 = vsub.f32 %v534_v34, %v1029_v23  ;;  %v535_v59 = vadd.f32 1.0, %v997_v10  ;;  %v370_v10 = vld [vmem:[%s958_s30] sm:$0xff] }
  0x26   : > { %852 = vpow2.f32 %v356_v39  ;;  %v536_v60 = vadd.f32 1.0, %v1000_v11  ;;  %v537_v62 = vadd.f32 1.0, %v1003_v12  ;;  %v366_v0 = vmul.f32 1.442695, %v336_v41 }
  0x27   : > { %854 = vpow2.f32 %v358_v44  ;;  %v538_v17 = vadd.f32 1.0, %v1012_v15  ;;  %v1149_v18 = vadd.f32 1.0, %v1023_v20  ;;  %v368_v61 = vmul.f32 1.442695, %v337_v9  ;;  %v371_v20 = vld [vmem:[%s958_s30 + $0x8] sm:$0xff] }
  0x28   : > { %856 = vpow2.f32 %v360_v46  ;;  %v1152_v16 = vadd.f32 1.0, %v1039_v26  ;;  %v1155_v23 = vadd.f32 1.0, %v1061_v33  ;;  %v1159_v11 = vadd.f32 1.0, %v1077_v38 }
  0x29   : > { %v1162_v12 = vadd.f32 1.0, %v1085_v43  ;;  %v1164_v22 = vadd.f32 1.0, %v317_v48  ;;  %v1166_v15 = vadd.f32 1.0, %v318_v49  ;;  %v835_v27 = vpop.eup %834  ;;  %858 = vpow2.f32 %v362_v51 }
  0x2a   : > { %v567_v26 = vsub.f32 %v535_v59, %v1033_v24  ;;  %v568_v33 = vsub.f32 %v536_v60, %v1044_v28  ;;  %v569_v34 = vsub.f32 %v537_v62, %v1048_v29  ;;  %v837_v39 = vpop.eup %836  ;;  %v570_v38 = vsub.f32 %v538_v17, %v1052_v30  ;;  %v372_v24 = vld [vmem:[%s958_s30 + $0x10] sm:$0xff] }
  0x2b   : > { %v571_v43 = vsub.f32 %v1149_v18, %v1066_v35  ;;  %v581_v48 = vmul.f32 %v835_v27, %v835_v27  ;;  %v386_v41 = vmul.f32 %v835_v27, %v370_v10  ;;  %860 = vpow2.f32 %v364_v54 }
  0x2c   : > { %v839_v49 = vpop.eup %838  ;;  %v572_v44 = vsub.f32 %v1152_v16, %v1070_v36  ;;  %v582_v9 = vmul.f32 %v837_v39, %v837_v39  ;;  %v387_v46 = vmul.f32 %v837_v39, %v371_v20  ;;  %862 = vpow2.f32 %v366_v0 }
  0x2d   : > { %v841_v28 = vpop.eup %840  ;;  %v583_v29 = vmul.f32 %v839_v49, %v839_v49  ;;  %v597_v62 = vsub.f32 %v565_v50, %v581_v48  ;;  %v1179_v30 = vadd.f32 %v386_v41, %v972_v1  ;;  %864 = vpow2.f32 %v368_v61 }
  0x2e   : > { %v1181_v51 = vpop.eup %842  ;;  %v584_v35 = vmul.f32 %v841_v28, %v841_v28  ;;  %v598_v54 = vsub.f32 %v566_v55, %v582_v9  ;;  %v403_v59 = vadd.f32 %v387_v46, %v975_v2  ;;  %v388_v1 = vmul.f32 %v839_v49, %v372_v24 }
  0x2f   : > { %v1184_v36 = vpop.eup %844  ;;  %v585_v60 = vmul.f32 %v1181_v51, %v1181_v51  ;;  %v599_v17 = vsub.f32 %v567_v26, %v583_v29  ;;  %v613_v0 = vsel %vm418_vm1, %v597_v62, 0.0  ;;  %419 = vst.msk [vmem:[%s963_s8] sm:$0xff] %vm418_vm1, %v1179_v30  ;;  %v1213_v46 = vadd.f32 1.0, %v1100_v53 }
  0x30   : > { %v1192_v50 = vpop.eup %846  ;;  %v586_v18 = vmul.f32 %v1184_v36, %v1184_v36  ;;  %v600_v55 = vsub.f32 %v568_v33, %v584_v35  ;;  %v614_v2 = vsel %vm418_vm1, %v598_v54, 0.0  ;;  %v436_v61 = vmul.f32 %v403_v59, %v403_v59  ;;  %420 = vst.msk [vmem:[%s963_s8 + $0x8] sm:$0xff] %vm418_vm1, %v403_v59  ;;  %v373_v59 = vld [vmem:[%s958_s30 + $0x18] sm:$0xff] }
  0x31   : > { %v1199_v16 = vpop.eup %848  ;;  %v587_v10 = vmul.f32 %v1192_v50, %v1192_v50  ;;  %v601_v20 = vsub.f32 %v569_v34, %v585_v60  ;;  %v615_v27 = vadd.f32 %v614_v2, %v613_v0  ;;  %v616_v26 = vsel %vm418_vm1, %v599_v17, 0.0 }
  0x32   : > { %v1204_v39 = vpop.eup %850  ;;  %v588_v33 = vmul.f32 %v1199_v16, %v1199_v16  ;;  %v602_v48 = vsub.f32 %v570_v38, %v586_v18  ;;  %v618_v41 = vsel %vm418_vm1, %v600_v55, 0.0  ;;  %v454_v49 = vsel %vm418_vm1, %v436_v61, 0.0 }
  0x33   : > { %v1210_v9 = vpop.eup %852  ;;  %v573_v34 = vsub.f32 %v1155_v23, %v1074_v37  ;;  %v589_v24 = vmul.f32 %v1204_v39, %v1204_v39  ;;  %v617_v29 = vadd.f32 %v616_v26, %v615_v27  ;;  %455 = vadd.xlane.f32.xlu1 %v454_v49  ;;  %v1222_v38 = vadd.f32 1.0, %v1120_v63 }
  0x34   : > { %v1219_v62 = vpop.eup %854  ;;  %v1225_v35 = vadd.f32 1.0, %v1123_v21  ;;  %v603_v54 = vsub.f32 %v571_v43, %v587_v10  ;;  %v620_v53 = vsel %vm418_vm1, %v601_v20, 0.0  ;;  %v574_v37 = vsub.f32 %v1159_v11, %v1082_v42  ;;  %v375_v10 = vld [vmem:[%s958_s30 + $0x28] sm:$0xff] }
  0x35   : > { %v1229_v60 = vpop.eup %856  ;;  %v575_v23 = vsub.f32 %v1162_v12, %v1090_v47  ;;  %v590_v63 = vmul.f32 %v1210_v9, %v1210_v9  ;;  %v619_v17 = vadd.f32 %v618_v41, %v617_v29  ;;  %v576_v21 = vsub.f32 %v1164_v22, %v1097_v52 }
  0x36   : > { %v604_v43 = vsub.f32 %v572_v44, %v588_v33  ;;  %v622_v0 = vsel %vm418_vm1, %v602_v48, 0.0  ;;  %v404_v18 = vadd.f32 %v388_v1, %v978_v3  ;;  %v1241_v55 = vpop.eup %858  ;;  %v591_v42 = vmul.f32 %v1219_v62, %v1219_v62  ;;  %v376_v48 = vld [vmem:[%s958_s30 + $0x30] sm:$0xff] }
  0x37   : > { %v605_v47 = vsub.f32 %v573_v34, %v589_v24  ;;  %v621_v11 = vadd.f32 %v620_v53, %v619_v17  ;;  %v389_v12 = vmul.f32 %v841_v28, %v373_v59  ;;  %v577_v2 = vsub.f32 %v1166_v15, %v1105_v56  ;;  %v374_v15 = vld [vmem:[%s958_s30 + $0x20] sm:$0xff]  ;;  %v377_v24 = vld [vmem:[%s958_s30 + $0x38] sm:$0xff]  ;;  %v379_v17 = vld [vmem:[%s958_s30 + $0x48] sm:$0xff] }
  0x38   : > { %v592_v52 = vmul.f32 %v1229_v60, %v1229_v60  ;;  %v624_v22 = vsel %vm418_vm1, %v603_v54, 0.0  ;;  %421 = vst.msk [vmem:[%s963_s8 + $0x10] sm:$0xff] %vm418_vm1, %v404_v18  ;;  %v437_v3 = vmul.f32 %v404_v18, %v404_v18  ;;  %v1252_v44 = vpop.eup %860  ;;  %v578_v1 = vsub.f32 %v1213_v46, %v1129_v8  ;;  %v378_v59 = vld [vmem:[%s958_s30 + $0x40] sm:$0xff] }
  0x39   : > { %v579_v28 = vsub.f32 %v1222_v38, %v1133_v40  ;;  %v606_v61 = vsub.f32 %v574_v37, %v590_v63  ;;  %v623_v56 = vadd.f32 %v622_v0, %v621_v11  ;;  %v1260_v20 = vpop.eup %862  ;;  %v580_v27 = vsub.f32 %v1225_v35, %v1138_v45  ;;  %v380_v0 = vld [vmem:[%s958_s30 + $0x50] sm:$0xff] }
  0x3a   : > { %v593_v26 = vmul.f32 %v1241_v55, %v1241_v55  ;;  %v626_v33 = vsel %vm418_vm1, %v604_v43, 0.0  ;;  %v457_v8 = vsel %vm418_vm1, %v437_v3, 0.0  ;;  %v1269_v40 = vpop.eup %864  ;;  %v607_v41 = vsub.f32 %v575_v23, %v591_v42 }
  0x3b   : > { %v625_v49 = vadd.f32 %v624_v22, %v623_v56  ;;  %v628_v46 = vsel %vm418_vm1, %v605_v47, 0.0  ;;  %458 = vadd.xlane.f32.xlu1 %v457_v8  ;;  %v1273_v34 = vadd.f32 %v389_v12, %v981_v4  ;;  %v594_v29 = vmul.f32 %v1252_v44, %v1252_v44  ;;  %v382_v22 = vld [vmem:[%s958_s30 + $0x60] sm:$0xff]  ;;  %v383_v56 = vld [vmem:[%s958_s30 + $0x68] sm:$0xff] }
  0x3c   : > { %v608_v38 = vsub.f32 %v576_v21, %v592_v52  ;;  %v390_v54 = vmul.f32 %v1181_v51, %v374_v15  ;;  %v391_v53 = vmul.f32 %v1184_v36, %v375_v10  ;;  %v595_v37 = vmul.f32 %v1260_v20, %v1260_v20  ;;  %v381_v52 = vld [vmem:[%s958_s30 + $0x58] sm:$0xff]  ;;  %v384_v10 = vld [vmem:[%s958_s30 + $0x70] sm:$0xff] }
  0x3d   : > { %v627_v23 = vadd.f32 %v626_v33, %v625_v49  ;;  %v630_v63 = vsel %vm418_vm1, %v606_v61, 0.0  ;;  %422 = vst.msk [vmem:[%s963_s8 + $0x18] sm:$0xff] %vm418_vm1, %v1273_v34  ;;  %v392_v4 = vmul.f32 %v1192_v50, %v376_v48  ;;  %v609_v21 = vsub.f32 %v577_v2, %v593_v26  ;;  %v385_v48 = vld [vmem:[%s958_s30 + $0x78] sm:$0xff] }
  0x3e   : > { %v406_v51 = vadd.f32 %v390_v54, %v984_v5  ;;  %v1291_v36 = vadd.f32 %v391_v53, %v987_v6  ;;  %v393_v43 = vmul.f32 %v1199_v16, %v377_v24  ;;  %v632_v42 = vsel %vm418_vm1, %v607_v41, 0.0 }
  0x3f   : > { %v629_v18 = vadd.f32 %v628_v46, %v627_v23  ;;  %v408_v47 = vadd.f32 %v392_v4, %v990_v7  ;;  %v394_v50 = vmul.f32 %v1204_v39, %v378_v59  ;;  %v596_v11 = vmul.f32 %v1269_v40, %v1269_v40 }
  0x40   : > { %423 = vst.msk [vmem:[%s963_s8 + $0x20] sm:$0xff] %vm418_vm1, %v406_v51  ;;  %v439_v5 = vmul.f32 %v406_v51, %v406_v51  ;;  %424 = vst.msk [vmem:[%s963_s8 + $0x28] sm:$0xff] %vm418_vm1, %v1291_v36  ;;  %v1306_v6 = vadd.f32 %v393_v43, %v1006_v13  ;;  %v395_v16 = vmul.f32 %v1210_v9, %v379_v17  ;;  %v634_v61 = vsel %vm418_vm1, %v608_v38, 0.0 }
  0x41   : > { %v631_v12 = vadd.f32 %v630_v63, %v629_v18  ;;  %425 = vst.msk [vmem:[%s963_s8 + $0x30] sm:$0xff] %vm418_vm1, %v408_v47  ;;  %v441_v7 = vmul.f32 %v408_v47, %v408_v47  ;;  %v410_v39 = vadd.f32 %v394_v50, %v1009_v14  ;;  %v396_v2 = vmul.f32 %v1219_v62, %v380_v0 }
  0x42   : > { %v610_v3 = vsub.f32 %v578_v1, %v594_v29  ;;  %v463_v13 = vsel %vm418_vm1, %v439_v5, 0.0  ;;  %426 = vst.msk [vmem:[%s963_s8 + $0x38] sm:$0xff] %vm418_vm1, %v1306_v6  ;;  %v411_v9 = vadd.f32 %v395_v16, %v1020_v19  ;;  %v611_v14 = vsub.f32 %v579_v28, %v595_v37 }
  0x43   : > { %v633_v15 = vadd.f32 %v632_v42, %v631_v12  ;;  %v636_v62 = vsel %vm418_vm1, %v609_v21, 0.0  ;;  %464 = vadd.xlane.f32.xlu1 %v463_v13  ;;  %427 = vst.msk [vmem:[%s963_s8 + $0x40] sm:$0xff] %vm418_vm1, %v410_v39  ;;  %v412_v1 = vadd.f32 %v396_v2, %v1036_v25  ;;  %v469_v26 = vsel %vm418_vm1, %v441_v7, 0.0 }
  0x44   : > { %v443_v33 = vmul.f32 %v410_v39, %v410_v39  ;;  %428 = vst.msk [vmem:[%s963_s8 + $0x48] sm:$0xff] %vm418_vm1, %v411_v9  ;;  %v397_v8 = vmul.f32 %v1229_v60, %v381_v52  ;;  %v398_v19 = vmul.f32 %v1241_v55, %v382_v22  ;;  %v612_v28 = vsub.f32 %v580_v27, %v596_v11 }
  0x45   : > { %v635_v41 = vadd.f32 %v634_v61, %v633_v15  ;;  %429 = vst.msk [vmem:[%s963_s8 + $0x50] sm:$0xff] %vm418_vm1, %v412_v1  ;;  %v399_v25 = vmul.f32 %v1252_v44, %v383_v56  ;;  %v638_v49 = vsel %vm418_vm1, %v610_v3, 0.0  ;;  %v400_v55 = vmul.f32 %v1260_v20, %v384_v10  ;;  %v1434_v20 = vld [vmem:[#allocation5_spill] sm:$0xff] }
  0x46   : > { %v413_v46 = vadd.f32 %v397_v8, %v1055_v31  ;;  %v414_v60 = vadd.f32 %v398_v19, %v1058_v32  ;;  %v401_v35 = vmul.f32 %v1269_v40, %v385_v48  ;;  %v640_v27 = vsel %vm418_vm1, %v611_v14, 0.0 }
  0x47   : > { %v637_v24 = vadd.f32 %v636_v62, %v635_v41  ;;  %470 = vadd.xlane.f32.xlu1 %v469_v26  ;;  %v415_v45 = vadd.f32 %v399_v25, %v1108_v57  ;;  %v475_v44 = vsel %vm418_vm1, %v443_v33, 0.0  ;;  %v445_v29 = vmul.f32 %v412_v1, %v412_v1 }
  0x48   : > { %430 = vst.msk [vmem:[%s963_s8 + $0x58] sm:$0xff] %vm418_vm1, %v413_v46  ;;  %431 = vst.msk [vmem:[%s963_s8 + $0x60] sm:$0xff] %vm418_vm1, %v414_v60  ;;  %v416_v31 = vadd.f32 %v400_v55, %v1111_v58  ;;  %v417_v38 = vadd.f32 %v401_v35, %v1434_v20  ;;  %v642_v57 = vsel %vm418_vm1, %v612_v28, 0.0  ;;  %v435_v54 = vmul.f32 %v1179_v30, %v1179_v30 }
  0x49   : > { %v639_v32 = vadd.f32 %v638_v49, %v637_v24  ;;  %432 = vst.msk [vmem:[%s963_s8 + $0x68] sm:$0xff] %vm418_vm1, %v415_v45  ;;  %v481_v53 = vsel %vm418_vm1, %v445_v29, 0.0  ;;  %v447_v59 = vmul.f32 %v414_v60, %v414_v60  ;;  %v438_v23 = vmul.f32 %v1273_v34, %v1273_v34 }
  0x4a   : > { %433 = vst.msk [vmem:[%s963_s8 + $0x70] sm:$0xff] %vm418_vm1, %v416_v31  ;;  %434 = vst.msk [vmem:[%s963_s8 + $0x78] sm:$0xff] %vm418_vm1, %v417_v38  ;;  %v451_v37 = vsel %vm418_vm1, %v435_v54, 0.0  ;;  %v449_v4 = vmul.f32 %v416_v31, %v416_v31  ;;  %v440_v30 = vmul.f32 %v1291_v36, %v1291_v36  ;;  %v442_v43 = vmul.f32 %v1306_v6, %v1306_v6 }
  0x4b   : > { %v641_v40 = vadd.f32 %v640_v27, %v639_v32  ;;  %476 = vadd.xlane.f32.xlu1 %v475_v44  ;;  %v487_v63 = vsel %vm418_vm1, %v447_v59, 0.0  ;;  %v460_v17 = vsel %vm418_vm1, %v438_v23, 0.0  ;;  %v444_v0 = vmul.f32 %v411_v9, %v411_v9 }
  0x4c   : > { %v493_v21 = vsel %vm418_vm1, %v449_v4, 0.0  ;;  %v466_v51 = vsel %vm418_vm1, %v440_v30, 0.0  ;;  %v472_v34 = vsel %vm418_vm1, %v442_v43, 0.0  ;;  %v446_v42 = vmul.f32 %v413_v46, %v413_v46 }
  0x4d   : > { %v643_v58 = vadd.f32 %v642_v57, %v641_v40  ;;  %v478_v18 = vsel %vm418_vm1, %v444_v0, 0.0  ;;  %v448_v47 = vmul.f32 %v415_v45, %v415_v45  ;;  %v450_v11 = vmul.f32 %v417_v38, %v417_v38  ;;  %v532_v38 = vld [vmem:[#allocation2] sm:$0x1] }
  0x4e   : > { %v484_v36 = vsel %vm418_vm1, %v446_v42, 0.0 }
  0x4f   : > { %644 = vadd.xlane.f32.xlu0 %v643_v58  ;;  %482 = vadd.xlane.f32.xlu1 %v481_v53  ;;  %v490_v50 = vsel %vm418_vm1, %v448_v47, 0.0  ;;  %v496_v5 = vsel %vm418_vm1, %v450_v11, 0.0 }
  0x53   : > { %452 = vadd.xlane.f32.xlu0 %v451_v37  ;;  %488 = vadd.xlane.f32.xlu1 %v487_v63 }
  0x57   : > { %461 = vadd.xlane.f32.xlu0 %v460_v17  ;;  %494 = vadd.xlane.f32.xlu1 %v493_v21 }
  0x5b   : > { %467 = vadd.xlane.f32.xlu0 %v466_v51 }
  0x5f   : > { %473 = vadd.xlane.f32.xlu0 %v472_v34 }
  0x63   : > { %479 = vadd.xlane.f32.xlu0 %v478_v18 }
  0x67   : > { %485 = vadd.xlane.f32.xlu0 %v484_v36 }
  0x6b   : > { %491 = vadd.xlane.f32.xlu0 %v490_v50 }
  0x6f   : > { %497 = vadd.xlane.f32.xlu0 %v496_v5 }
  0xbc   : > { %v456_v6 = vpop.xlane.xlu1 %455 }
  0xbd   : > { %v500_v16 = vadd.f32 0.5, %v456_v6 }
  0xbf   : > { %517 = vst.msk [vmem:[%s968_s11 + $0x8] sm:$0xff] %vm515_vm2, %v500_v16 }
  0xc4   : > { %v459_v12 = vpop.xlane.xlu1 %458 }
  0xc5   : > { %v501_v7 = vadd.f32 0.5, %v459_v12 }
  0xc7   : > { %518 = vst.msk [vmem:[%s968_s11 + $0x10] sm:$0xff] %vm515_vm2, %v501_v7 }
  0xcc   : > { %v465_v39 = vpop.xlane.xlu1 %464 }
  0xcd   : > { %v503_v2 = vadd.f32 0.5, %v465_v39 }
  0xcf   : > { %520 = vst.msk [vmem:[%s968_s11 + $0x20] sm:$0xff] %vm515_vm2, %v503_v2 }
  0xd0   : > { %v471_v52 = vpop.xlane.xlu1 %470 }
  0xd1   : > { %v505_v22 = vadd.f32 0.5, %v471_v52 }
  0xd3   : > { %522 = vst.msk [vmem:[%s968_s11 + $0x30] sm:$0xff] %vm515_vm2, %v505_v22 }
  0xd4   : > { %v477_v3 = vpop.xlane.xlu1 %476 }
  0xd5   : > { %v507_v61 = vadd.f32 0.5, %v477_v3 }
  0xd7   : > { %524 = vst.msk [vmem:[%s968_s11 + $0x40] sm:$0xff] %vm515_vm2, %v507_v61 }
  0xd8   : > { %v645_v13 = vpop.xlane.xlu0 %644  ;;  %v483_v9 = vpop.xlane.xlu1 %482 }
  0xd9   : > { %v646_v56 = vrot.slane %v645_v13, 4  ;;  %v509_v14 = vadd.f32 0.5, %v483_v9 }
  0xdb   : > { %v647_v15 = vadd.f32 %v646_v56, %v645_v13  ;;  %526 = vst.msk [vmem:[%s968_s11 + $0x50] sm:$0xff] %vm515_vm2, %v509_v14 }
  0xdc   : > { %v453_v62 = vpop.xlane.xlu0 %452  ;;  %v489_v1 = vpop.xlane.xlu1 %488 }
  0xdd   : > { %v648_v10 = vrot.slane %v647_v15, 2  ;;  %v499_v26 = vadd.f32 0.5, %v453_v62  ;;  %v511_v33 = vadd.f32 0.5, %v489_v1 }
  0xdf   : > { %v649_v8 = vadd.f32 %v648_v10, %v647_v15  ;;  %516 = vst.msk [vmem:[%s968_s11] sm:$0xff] %vm515_vm2, %v499_v26  ;;  %528 = vst.msk [vmem:[%s968_s11 + $0x60] sm:$0xff] %vm515_vm2, %v511_v33 }
  0xe0   : > { %v462_v19 = vpop.xlane.xlu0 %461  ;;  %v495_v48 = vpop.xlane.xlu1 %494 }
  0xe1   : > { %v650_v28 = vrot.slane %v649_v8, 1  ;;  %v502_v41 = vadd.f32 0.5, %v462_v19  ;;  %v513_v25 = vadd.f32 0.5, %v495_v48 }
  0xe3   : > { %v651_v49 = vadd.f32 %v650_v28, %v649_v8  ;;  %519 = vst.msk [vmem:[%s968_s11 + $0x18] sm:$0xff] %vm515_vm2, %v502_v41  ;;  %530 = vst.msk [vmem:[%s968_s11 + $0x70] sm:$0xff] %vm515_vm2, %v513_v25 }
  0xe4   : > { %v468_v46 = vpop.xlane.xlu0 %467 }
  0xe5   : > { %816 = vpush %v651_v49  ;;  %v504_v60 = vadd.f32 0.5, %v468_v46 }
  0xe7   : > { %521 = vst.msk [vmem:[%s968_s11 + $0x28] sm:$0xff] %vm515_vm2, %v504_v60 }
  0xe8   : > { %v474_v55 = vpop.xlane.xlu0 %473 }
  0xe9   : > { %v506_v24 = vadd.f32 0.5, %v474_v55 }
  0xeb   : > { %523 = vst.msk [vmem:[%s968_s11 + $0x38] sm:$0xff] %vm515_vm2, %v506_v24 }
  0xec   : > { %v480_v45 = vpop.xlane.xlu0 %479 }
  0xed   : > { %v508_v35 = vadd.f32 0.5, %v480_v45 }
  0xef   : > { %525 = vst.msk [vmem:[%s968_s11 + $0x48] sm:$0xff] %vm515_vm2, %v508_v35 }
  0xf0   : > { %v486_v27 = vpop.xlane.xlu0 %485 }
  0xf1   : > { %v510_v44 = vadd.f32 0.5, %v486_v27 }
  0xf3   : > { %527 = vst.msk [vmem:[%s968_s11 + $0x58] sm:$0xff] %vm515_vm2, %v510_v44 }
  0xf4   : > { %v492_v29 = vpop.xlane.xlu0 %491 }
  0xf5   : > { %v512_v31 = vadd.f32 0.5, %v492_v29 }
  0xf7   : > { %529 = vst.msk [vmem:[%s968_s11 + $0x68] sm:$0xff] %vm515_vm2, %v512_v31 }
  0xf8   : > { %v498_v32 = vpop.xlane.xlu0 %497 }
  0xf9   : > { %v514_v20 = vadd.f32 0.5, %v498_v32 }
  0xfb   : > { %531 = vst.msk [vmem:[%s968_s11 + $0x78] sm:$0xff] %vm515_vm2, %v514_v20 }
 0x116   : > { %s817_s12 = spop %816 }
 0x117   : > { %v653_v57 = vstv %s817_s12 }
 0x118   : > { %v654_v40 = vmul.f32 -0.5, %v653_v57 }
 0x11a   : > { %v655_v54 = vadd.f32 %v654_v40, %v532_v38 }
 0x11c   : > { %657 = vst.msk [vmem:[#allocation2] sm:$0x1] %vm656_vm3, %v655_v54 }
 0x11d   : > { %879 = shalt.err (!%p876_p12)
}
 0x11e   : > { %819 = dma.vmem_to_hbm [thread:$0]  (%p822_p5), %s684_s14, 16, %s1431_s5, [#allocation3]  }
 0x11f   : > { %895 = dma.done.wait (%p822_p5), [#allocation3], 16  }
 0x120   : > { %897 = vsyncadd (%p822_p5), [#allocation3], 4294967280 }
 0x121 PF: > { %s17_s18 = sadd.s32 1, %s900_s18  }
 0x122   : > { %p14_p13 = scmp.ge.s32.totalorder %s17_s18, 5  }
 0x124   :  { %16 = sbr.rel (!%p14_p13) target bundleno = 1 (0x1), region = 93 }
 0x129   :  { %712 = vsyncpa [#allocation3], 1 }
 0x12a   :  { %714 = vsyncpa [#allocation3 + $0x1], 1 }

</bundles_post_ra>
